<compile_context>
chip_gen: v7x
topology: tpu7x:2x2x1
jax: 0.10.0
libtpu: 0.0.40
codegen_flags: <defaults>
</compile_context>

<pallas_src>
import functools

import jax
import jax.numpy as jnp
from jax.experimental import pallas as pl
from jax.experimental.pallas import tpu as pltpu


def _round_up(x, m):
    return ((x + m - 1) // m) * m


def _proj2_kernel(x_ref, w1_ref, b1_ref, w2_ref, b2_ref, o_ref, *,
                  normalize, compute_dtype):
    # x_ref:  (tm, d_appearance)       streamed row tile (caller's dtype)
    # w1_ref: (d_appearance, embed)    resident (constant index_map), y = x @ W1
    # b1_ref: (1, embed)               f32
    # w2_ref: (embed, embed)           resident
    # b2_ref: (1, embed)               f32
    # o_ref:  (tm, embed)
    #
    # Cast to the MXU operand dtype *inside* the kernel: avoids a separate XLA
    # pass over x in HBM, costs only a VPU op (huge slack in this regime).
    x = x_ref[...].astype(compute_dtype)

    # Layer 1: MXU matmul with bf16 operands, f32 accumulation.
    h = jnp.dot(x, w1_ref[...], preferred_element_type=jnp.float32)
    h = jnp.maximum(h + b1_ref[...], 0.0)          # bias + ReLU in f32 (VPU)
    # TODO(synk): dropout omitted (inference identity) -> kernel is eval-only.

    # Layer 2: cast activation back to MXU-native dtype, accumulate in f32.
    h = h.astype(w2_ref.dtype)
    y = jnp.dot(h, w2_ref[...], preferred_element_type=jnp.float32) + b2_ref[...]

    if normalize:
        # F.normalize(y, 2, -1) == y / max(||y||_2, 1e-12)
        #                       == y * rsqrt(max(||y||^2, 1e-24))
        sq = jnp.sum(y * y, axis=-1, keepdims=True)          # XLU row reduce
        y = y * jax.lax.rsqrt(jnp.maximum(sq, 1e-24))        # EUP rsqrt, VPU mul

    o_ref[...] = y.astype(o_ref.dtype)


def visual_precomp_forward(precomp_feats, w1, b1, w2, b2, *,
                           normalize=False, tm=1024,
                           compute_dtype=jnp.bfloat16,
                           out_dtype=None):
    """VisualPrecomp.forward (num_layers=2 path) via a Pallas TPU kernel.

    precomp_feats: [..., d_appearance]
    w1: [d_appearance, embed]   (PyTorch Linear weight, already transposed)
    b1: [embed]
    w2: [embed, embed]
    b2: [embed]
    compute_dtype: dtype fed to the MXU (bf16 recommended; None => stored dtype).
    out_dtype:     output dtype (None => precomp_feats.dtype). Pass bf16 to
                   halve store traffic if the consumer tolerates it.
    returns: [..., embed] in out_dtype
    """
    d_app, embed = w1.shape
    in_dtype = precomp_feats.dtype
    out_dtype = in_dtype if out_dtype is None else out_dtype
    lead_shape = precomp_feats.shape[:-1]

    x2d = precomp_feats.reshape(-1, d_app)
    M = x2d.shape[0]

    mxu_dtype = compute_dtype if compute_dtype is not None else in_dtype

    # Weights cast once in the wrapper (tiny, DMA'd once, resident in VMEM);
    # biases kept in f32 so bias/ReLU/normalize run in f32 on the VPU/EUP.
    w1c = w1.astype(mxu_dtype)
    w2c = w2.astype(mxu_dtype)
    b1_2d = b1.reshape(1, embed).astype(jnp.float32)
    b2_2d = b2.reshape(1, embed).astype(jnp.float32)

    # Tile selection: as large as requested, but
    #   * keep >= 2 grid steps when M allows it (v7x shards the "parallel" row
    #     axis across its 2 TensorCores),
    #   * never exceed M (rounded to the sublane count),
    #   * always a multiple of 8.
    tm_cap_v7x = _round_up(pl.cdiv(M, 2), 256)
    tm_eff = max(8, min(tm, tm_cap_v7x, _round_up(M, 8)))
    assert tm_eff % 8 == 0

    # No padding / post-slice: ragged M handled by Pallas's masked partial
    # trailing block (grid = cdiv, block indices past M read unspecified data
    # whose results are discarded; writes are masked).
    n_blocks = pl.cdiv(M, tm_eff)

    # Honest scoped-VMEM budget (double-buffered x/out tiles, default
    # double-buffered resident weights, biases, in-kernel bf16 x copy and
    # f32 h/y temporaries), x2 safety, capped at 32 MiB (legal on v5e/v6e/v7x).
    x_it = jnp.dtype(x2d.dtype).itemsize
    w_it = jnp.dtype(mxu_dtype).itemsize
    o_it = jnp.dtype(out_dtype).itemsize
    est = (2 * tm_eff * d_app * x_it                        # x tile   (double-buffered)
           + 2 * tm_eff * embed * o_it                      # out tile (double-buffered)
           + 2 * (d_app * embed + embed * embed) * w_it     # W1, W2   (double-buffered)
           + 2 * 2 * embed * 4                              # biases
           + tm_eff * d_app * w_it                          # bf16 copy of x tile
           + 3 * tm_eff * embed * 4)                        # f32 h / y temporaries
    vmem_limit = int(min(max(2 * est, 4 << 20), 32 << 20))

    kernel = functools.partial(_proj2_kernel, normalize=normalize,
                               compute_dtype=mxu_dtype)

    out2d = pl.pallas_call(
        kernel,
        out_shape=jax.ShapeDtypeStruct((M, embed), out_dtype),
        grid_spec=pltpu.PrefetchScalarGridSpec(
            num_scalar_prefetch=0,
            grid=(n_blocks,),
            in_specs=[
                pl.BlockSpec((tm_eff, d_app), lambda i: (i, 0)),   # x tile (streamed)
                pl.BlockSpec((d_app, embed), lambda i: (0, 0)),    # W1 (resident)
                pl.BlockSpec((1, embed), lambda i: (0, 0)),        # b1 (resident)
                pl.BlockSpec((embed, embed), lambda i: (0, 0)),    # W2 (resident)
                pl.BlockSpec((1, embed), lambda i: (0, 0)),        # b2 (resident)
            ],
            out_specs=pl.BlockSpec((tm_eff, embed), lambda i: (i, 0)),
        ),
        compiler_params=pltpu.CompilerParams(
            dimension_semantics=("parallel",),      # rows shard across v7x's 2 TCs
            vmem_limit_bytes=vmem_limit),
    )(x2d, w1c, b1_2d, w2c, b2_2d)

    return out2d.reshape(*lead_shape, embed)


def _reference_forward(x, w1, b1, w2, b2, *, normalize=False, compute_dtype=None):
    """Pure-JAX reference with the same operand rounding as the kernel."""
    cd = compute_dtype if compute_dtype is not None else x.dtype
    f32 = jnp.float32
    hi = jax.lax.Precision.HIGHEST
    xf = x.astype(cd).astype(f32)
    w1f = w1.astype(cd).astype(f32)
    w2f = w2.astype(cd).astype(f32)
    h = jnp.maximum(jnp.dot(xf, w1f, precision=hi) + b1.astype(f32), 0.0)
    h = h.astype(cd).astype(f32)
    y = jnp.dot(h, w2f, precision=hi) + b2.astype(f32)
    if normalize:
        sq = jnp.sum(y * y, axis=-1, keepdims=True)
        y = y * jax.lax.rsqrt(jnp.maximum(sq, 1e-24))
    return y.astype(x.dtype)


if __name__ == "__main__":
    # Small shapes consistent with the module: pre-extracted region features
    # [B, N, d_appearance] projected to embed_size.  N=200 gives M=400 rows:
    # tm_eff clamps to 256 -> a 2-step grid whose final block is partial (144
    # rows), exercising the unpadded ragged-M path.
    B, N = 2, 200
    d_appearance = 256
    embed_size = 128

    key = jax.random.PRNGKey(0)
    kx, kw1, kb1, kw2, kb2 = jax.random.split(key, 5)

    precomp_feats = jax.random.normal(kx, (B, N, d_appearance), dtype=jnp.float32)

    # nn.Linear-style uniform fan-in init.
    bound1 = 1.0 / float(d_appearance) ** 0.5
    bound2 = 1.0 / float(embed_size) ** 0.5
    w1 = jax.random.uniform(kw1, (d_appearance, embed_size),
                            minval=-bound1, maxval=bound1, dtype=jnp.float32)
    b1 = jax.random.uniform(kb1, (embed_size,),
                            minval=-bound1, maxval=bound1, dtype=jnp.float32)
    w2 = jax.random.uniform(kw2, (embed_size, embed_size),
                            minval=-bound2, maxval=bound2, dtype=jnp.float32)
    b2 = jax.random.uniform(kb2, (embed_size,),
                            minval=-bound2, maxval=bound2, dtype=jnp.float32)

    out = visual_precomp_forward(precomp_feats, w1, b1, w2, b2,
                                 normalize=False,
                                 compute_dtype=jnp.bfloat16)
    out = jax.block_until_ready(out)

    ref = _reference_forward(precomp_feats, w1, b1, w2, b2,
                             normalize=False, compute_dtype=jnp.bfloat16)

    assert out.shape == (B, N, embed_size)
    # bf16 MXU operands + f32 accumulation vs. identically-rounded f32 reference:
    # only accumulation-order differences remain, so a tight tolerance holds.
    assert jnp.allclose(out, ref, atol=2e-3, rtol=2e-3), (
        float(jnp.max(jnp.abs(out - ref))))

    # Also exercise the normalize=True branch (checks rsqrt epilogue + the
    # masked partial block under normalization).
    out_n = visual_precomp_forward(precomp_feats, w1, b1, w2, b2,
                                   normalize=True,
                                   compute_dtype=jnp.bfloat16)
    out_n = jax.block_until_ready(out_n)
    ref_n = _reference_forward(precomp_feats, w1, b1, w2, b2,
                               normalize=True, compute_dtype=jnp.bfloat16)
    assert jnp.allclose(out_n, ref_n, atol=2e-3, rtol=2e-3), (
        float(jnp.max(jnp.abs(out_n - ref_n))))

    print("KERNEL_OK")
</pallas_src>

<mosaic_0001>
module attributes {stable_mosaic.version = 11 : i64} {
  func.func @_proj2_kernel(%arg0: i32, %arg1: memref<256x256xf32, #tpu.memory_space<vmem>>, %arg2: memref<256x128xbf16, #tpu.memory_space<vmem>>, %arg3: memref<1x128xf32, #tpu.memory_space<vmem>>, %arg4: memref<128x128xbf16, #tpu.memory_space<vmem>>, %arg5: memref<1x128xf32, #tpu.memory_space<vmem>>, %arg6: memref<256x128xf32, #tpu.memory_space<vmem>>) attributes {dimension_semantics = [#tpu.dimension_semantics<parallel>], iteration_bounds = array<i64: 2>, scalar_prefetch = 0 : i64, scratch_operands = 0 : i64, tpu.core_type = #tpu.core_type<tc>, window_params = [{transform_indices = @transform_0, window_bounds = array<i64: 256, 256>}, {pipeline_mode = #tpu.pipeline_mode<synchronous>, transform_indices = @transform_1, window_bounds = array<i64: 256, 128>}, {pipeline_mode = #tpu.pipeline_mode<synchronous>, transform_indices = @transform_2, window_bounds = array<i64: 1, 128>}, {pipeline_mode = #tpu.pipeline_mode<synchronous>, transform_indices = @transform_3, window_bounds = array<i64: 128, 128>}, {pipeline_mode = #tpu.pipeline_mode<synchronous>, transform_indices = @transform_4, window_bounds = array<i64: 1, 128>}, {transform_indices = @transform_5, window_bounds = array<i64: 256, 128>}]} {
    %c0 = arith.constant 0 : index
    %c0_0 = arith.constant 0 : index
    %0 = vector.load %arg1[%c0, %c0_0] : memref<256x256xf32, #tpu.memory_space<vmem>>, vector<256x256xf32>
    %1 = arith.truncf %0 : vector<256x256xf32> to vector<256x256xbf16>
    %c0_1 = arith.constant 0 : index
    %c0_2 = arith.constant 0 : index
    %2 = vector.load %arg2[%c0_1, %c0_2] : memref<256x128xbf16, #tpu.memory_space<vmem>>, vector<256x128xbf16>
    %cst = arith.constant dense<0.000000e+00> : vector<256x128xf32>
    %3 = tpu.matmul %1, %2, %cst {dimension_numbers = #tpu.dot_dimension_numbers<[1], [0], [0], [1], [0, 0, 1, 1], [], []>} : vector<256x256xbf16>, vector<256x128xbf16>, vector<256x128xf32> -> vector<256x128xf32>
    %c0_3 = arith.constant 0 : index
    %c0_4 = arith.constant 0 : index
    %4 = vector.load %arg3[%c0_3, %c0_4] : memref<1x128xf32, #tpu.memory_space<vmem>>, vector<1x128xf32>
    %5 = vector.broadcast %4 : vector<1x128xf32> to vector<256x128xf32>
    %6 = arith.addf %3, %5 : vector<256x128xf32>
    %cst_5 = arith.constant 0.000000e+00 : f32
    %7 = vector.broadcast %cst_5 : f32 to vector<256x128xf32>
    %8 = arith.maximumf %6, %7 : vector<256x128xf32>
    %9 = arith.truncf %8 : vector<256x128xf32> to vector<256x128xbf16>
    %c0_6 = arith.constant 0 : index
    %c0_7 = arith.constant 0 : index
    %10 = vector.load %arg4[%c0_6, %c0_7] : memref<128x128xbf16, #tpu.memory_space<vmem>>, vector<128x128xbf16>
    %cst_8 = arith.constant dense<0.000000e+00> : vector<256x128xf32>
    %11 = tpu.matmul %9, %10, %cst_8 {dimension_numbers = #tpu.dot_dimension_numbers<[1], [0], [0], [1], [0, 0, 1, 1], [], []>} : vector<256x128xbf16>, vector<128x128xbf16>, vector<256x128xf32> -> vector<256x128xf32>
    %c0_9 = arith.constant 0 : index
    %c0_10 = arith.constant 0 : index
    %12 = vector.load %arg5[%c0_9, %c0_10] : memref<1x128xf32, #tpu.memory_space<vmem>>, vector<1x128xf32>
    %13 = vector.broadcast %12 : vector<1x128xf32> to vector<256x128xf32>
    %14 = arith.addf %11, %13 : vector<256x128xf32>
    %c0_11 = arith.constant 0 : index
    %c0_12 = arith.constant 0 : index
    %15 = vector.load %arg6[%c0_11, %c0_12] : memref<256x128xf32, #tpu.memory_space<vmem>>, vector<256x128xf32>
    tpu.vector_store %arg6[%c0_11, %c0_12], %14 {strides = array<i32>} : memref<256x128xf32, #tpu.memory_space<vmem>>, vector<256x128xf32>,
    return
  }
  func.func @transform_0(%arg0: i32) -> (i32, i32) {
    %c0_i32 = arith.constant 0 : i32
    %c0_i32_0 = arith.constant 0 : i32
    return %arg0, %c0_i32 : i32, i32
  }
  func.func @transform_1(%arg0: i32) -> (i32, i32) {
    %c0_i32 = arith.constant 0 : i32
    %c0_i32_0 = arith.constant 0 : i32
    %c0_i32_1 = arith.constant 0 : i32
    return %c0_i32, %c0_i32_0 : i32, i32
  }
  func.func @transform_2(%arg0: i32) -> (i32, i32) {
    %c0_i32 = arith.constant 0 : i32
    %c0_i32_0 = arith.constant 0 : i32
    %c0_i32_1 = arith.constant 0 : i32
    return %c0_i32, %c0_i32_0 : i32, i32
  }
  func.func @transform_3(%arg0: i32) -> (i32, i32) {
    %c0_i32 = arith.constant 0 : i32
    %c0_i32_0 = arith.constant 0 : i32
    %c0_i32_1 = arith.constant 0 : i32
    return %c0_i32, %c0_i32_0 : i32, i32
  }
  func.func @transform_4(%arg0: i32) -> (i32, i32) {
    %c0_i32 = arith.constant 0 : i32
    %c0_i32_0 = arith.constant 0 : i32
    %c0_i32_1 = arith.constant 0 : i32
    return %c0_i32, %c0_i32_0 : i32, i32
  }
  func.func @transform_5(%arg0: i32) -> (i32, i32) {
    %c0_i32 = arith.constant 0 : i32
    %c0_i32_0 = arith.constant 0 : i32
    return %arg0, %c0_i32 : i32, i32
  }
}

</mosaic_0001>

<bundles_post_ra>
// kernel: tpu_custom_call.1
= control target key start
LH: loop header
LB: loop body
LE: loop exit
PB: predicated region body
PF: predicated region fallthrough
CT: control target
= control target key end

     0   :  { %10 = vsyncpa [#allocation3], 0  ;;  %s2085_s0 = inlined_call_operand.hbm [shape: f32[400,256], index: 0, kind: input, shape index: {}]   ;;  %s2086_s1 = inlined_call_operand.hbm [shape: bf16[256,128], index: 1, kind: input, shape index: {}]   ;;  %s2087_s2 = inlined_call_operand.vmem [shape: f32[1,128], index: 2, kind: input, shape index: {}]   ;;  %s2088_s3 = inlined_call_operand.hbm [shape: bf16[128,128], index: 3, kind: input, shape index: {}]   ;;  %s2089_s4 = inlined_call_operand.vmem [shape: f32[1,128], index: 4, kind: input, shape index: {}]   ;;  %s2090_s5 = inlined_call_operand.hbm [shape: f32[400,128], index: 5, kind: output, shape index: {}]  }
   0x1   :  { %12 = vsyncpa [#allocation3 + $0x1], 0 }
   0x2   :  { %13 = vsyncpa [#allocation6], 0 }
   0x3   :  { %14 = vsyncpa [#allocation4], 0 }
   0x4   :  { %16 = vsyncpa [#allocation4 + $0x1], 0  ;;  %s1652_s18 = smov 0   ;;  %s1654_s19 = smov 0  }
   0x5   :  { %s1656_s20 = smov 0   ;;  %s1658_s21 = smov 0  }
   0x6 LB: > { %s1673_s22 = sadd.s32 4294967295, %s1610_s21   ;;  %s1108_s23 = sadd.s32 4294967294, %s1610_s21   ;;  %s1610_s21 = sphi %s1658_s21, %s2112_s21   ;;  %s1606_s20 = sphi %s1656_s20, %s2111_s20   ;;  %s1602_s19 = sphi %s1654_s19, %s2110_s19   ;;  %s1598_s18 = sphi %s1652_s18, %s2109_s18  }
   0x7   : > { %s1677_s24 = sadd.s32 1, %s1610_s21   ;;  %s29_s25 = sadd.s32 1, %s1606_s20 }
   0x8   : > { %s26_s26 = ssub.s32 %s1610_s21, %s1677_s24  ;;  %p36_p0 = scmp.ne.s32.totalorder %s1606_s20, %s1602_s19 }
   0x9   : > { %p27_p1 = scmp.eq.s32.totalorder %s26_s26, 0  ;;  %p37_p2 = scmp.eq.s32.totalorder %s1610_s21, 0 }
   0xa   : > { %p42_p3 = scmp.ne.s32.totalorder %s1602_s19, %s1598_s18  ;;  %p2091_p4 = scmp.eq.s32.totalorder %s1673_s22, 0 }
   0xb   : > { %s1689_s27 = scalar_select %p27_p1, %s1606_s20, %s29_s25  }
   0xc   : > { %p1691_p5 = por %p37_p2, %p36_p0  ;;  %p1697_p6 = por %p2091_p4, %p42_p3 }
   0xd   : > { %2094 = sst [smem:[#allocation12_spill]] %s1689_s27  ;;  %p150_p7 = scmp.eq.s32.totalorder %s1673_s22, 1 }
   0xe   : > { %s2095_s28 = scalar_select %p1691_p5, 1, 0 }
   0xf   : > { %s2096_s29 = scalar_select %p1697_p6, 1, 0 }
  0x10   : > { %p156_p8 = scmp.eq.s32.totalorder %s1108_s23, 1  ;;  %p1109_p9 = scmp.ge.s32.totalorder %s1610_s21, 1 }
  0x11   : > { %p163_p10 = scmp.lt.s32.totalorder %s1610_s21, 3  ;;  %p1704_p11 = por %p150_p7, %p36_p0 }
  0x12   : > { %p1708_p12 = por %p156_p8, %p42_p3  ;;  %s1612_s8 = smov [#allocation5]  }
  0x13   : > { %s2097_s30 = scalar_select %p1704_p11, 1, 0 }
  0x14   : > { %s2098_s6 = scalar_select %p1708_p12, 1, 0 }
  0x15   : > { %p1712_p13 = pnand %p1109_p9, %p163_p10  ;;  %s175_s9 = sshll.u32 %s1612_s8, 4  ;;  %s176_s9 = int_to_ptr.vmem [resolvable:$true] %s175_s9 }
  0x16   : > { %s1613_s11 = smov [#allocation7]   ;;  %s1456_s15 = scalar_lea.hbm %s2086_s1, 2048 }
  0x17   : > { %s2099_s7 = scalar_select %p1712_p13, 1, 0 }
  0x18   : > { %p1376_p1 = pneg %p1712_p13  ;;  %s191_s12 = sshll.u32 %s1613_s11, 4  ;;  %s1724_s12 = int_to_ptr.vmem [resolvable:$true] %s191_s12 }
  0x19   : > { %p1457_p0 = scmp.ne.s32.totalorder %s2086_s1, %s1456_s15  ;;  %p1463_p9 = scmp.lt.u32.totalorder %s1456_s15, %s2086_s1 }
  0x1a   : > { %p1720_p2 = pnand %p1376_p1, %p2091_p4 }
  0x1c   : > { %p1458_p3 = pneg %p1720_p2 }
  0x1e   : > { %p1459_p7 = pnand %p1458_p3, %p1457_p0 }
  0x20   : > { %p1460_p8 = pneg %p1459_p7 }
  0x22   : > { %p1465_p10 = pnand %p1463_p9, %p1460_p8 }
  0x24   : > { %1468 = shalt.err (!%p1465_p10)
}
  0x25   : > { %s1469_s26 = scalar_lea.vmem %s176_s9, 2048  ;;  %p1477_p11 = scmp.lt.s32.totalorder %s176_s9, %s176_s9 }
  0x26   : > { %p1470_p1 = scmp.ne.s32.totalorder %s176_s9, %s1469_s26  ;;  %p1478_p6 = scmp.lt.s32.totalorder %s1469_s26, %s1469_s26 }
  0x28   : > { %p1472_p4 = pnand %p1470_p1, %p1458_p3  ;;  %p1479_p13 = por %p1478_p6, %p1477_p11 }
  0x2a   : > { %p1473_p12 = pneg %p1472_p4 }
  0x2c   : > { %p1480_p5 = pnand %p1479_p13, %p1473_p12 }
  0x2e   : > { %1483 = shalt.err (!%p1480_p5)
}
  0x2f   : > { %s1614_s8 = smov 64   ;;  %s1615_s11 = smov 4  }
  0x30   : > { %1379 = dma.hbm_to_vmem [thread:$0]  (!%p1720_p2), %s2086_s1, 2048, %s176_s9, [#allocation6], %s1614_s8, %s1614_s8, %s1615_s11  }
  0x31   : > { %s1484_s17 = scalar_lea.hbm %s2088_s3, 1024 }
  0x32   : > { %p1485_p4 = scmp.ne.s32.totalorder %s2088_s3, %s1484_s17  ;;  %p1491_p11 = scmp.lt.u32.totalorder %s1484_s17, %s2088_s3 }
  0x34   : > { %p1487_p5 = pnand %p1485_p4, %p1458_p3 }
  0x36   : > { %p1488_p6 = pneg %p1487_p5 }
  0x38   : > { %p1493_p12 = pnand %p1491_p11, %p1488_p6 }
  0x3a   : > { %1496 = shalt.err (!%p1493_p12)
}
  0x3b   : > { %s1497_s9 = scalar_lea.vmem %s1724_s12, 1024  ;;  %p1505_p8 = scmp.lt.s32.totalorder %s1724_s12, %s1724_s12 }
  0x3c   : > { %p1498_p13 = scmp.ne.s32.totalorder %s1724_s12, %s1497_s9  ;;  %p1506_p9 = scmp.lt.s32.totalorder %s1497_s9, %s1497_s9 }
  0x3e   : > { %p1500_p0 = pnand %p1498_p13, %p1458_p3  ;;  %p1507_p10 = por %p1506_p9, %p1505_p8 }
  0x40   : > { %p1501_p7 = pneg %p1500_p0 }
  0x42   : > { %p1508_p1 = pnand %p1507_p10, %p1501_p7 }
  0x44   : > { %1511 = shalt.err (!%p1508_p1)
}
  0x45   : > { %1382 = dma.hbm_to_vmem [thread:$0]  (!%p1720_p2), %s2088_s3, 1024, %s1724_s12, [#allocation6], %s1614_s8, %s1614_s8, %s1615_s11  }
  0x46   : > { %p1112_p4 = scmp.ge.s32.totalorder %s1610_s21, 2 }
  0x47   : > { %p2101_p3 = scmp.ne.s32.totalorder (!%p1112_p4), %s2095_s28, 0 }
  0x48   : > { %204 = sbr.rel (%p1112_p4) target bundleno = 114 (0x72), region = 32 }
  0x4f   : > { %207 = sbr.rel (!%p2101_p3) target bundleno = 114 (0x72), region = 36  ;;  %s208_s14 = sand.u32 (%p2101_p3), 1, %s1606_s20  }
  0x50   : > { %s1114_s15 = sshll.u32 (%p2101_p3), %s1610_s21, 5  ;;  %s1113_s16 = sshll.u32 (%p2101_p3), %s208_s14, 9 }
  0x51   : > { %s214_s17 = ssub.s32 (%p2101_p3), 50, %s1114_s15  ;;  %s1783_s8 = scalar_lea.sflag (%p2101_p3), [#allocation3], %s208_s14 }
  0x52   : > { %p215_p5 = scmp.lt.s32.totalorder (%p2101_p3), %s214_s17, 32  ;;  %s212_s11 = scalar_lea.vmem (%p2101_p3), [#allocation2], %s1113_s16 }
  0x56   : > { %s2114_s17 = smov (!%p215_p5, %s214_s17), 32 }
  0x57   : > { %s1780_s10 = sshll.u32 %s2114_s17, 8 }
  0x58   : > { %s220_s12 = ssub.s32 8192, %s1780_s10 }
  0x59   : > { %221 = vsyncadd %s1783_s8, %s220_s12  ;;  %p1117_p2 = scmp.ne.s32.totalorder %s1780_s10, 0  ;;  %s1164_s28 = sshll.u32 %s1610_s21, 13 }
  0x5a   : > { %s1791_s26 = scalar_lea.hbm %s2085_s0, %s1164_s28  ;;  %s227_s9 = sshll.u32 %s212_s11, 4  ;;  %s1793_s9 = int_to_ptr.vmem [resolvable:$true] %s227_s9 }
  0x5b   : > { %s1512_s27 = scalar_lea.hbm %s1791_s26, %s1780_s10  ;;  %s1516_s15 = scalar_lea.hbm %s2085_s0, 12800 }
  0x5c   : > { %p1513_p6 = scmp.ne.s32.totalorder %s1791_s26, %s1512_s27  ;;  %p1517_p13 = scmp.lt.u32.totalorder %s1791_s26, %s2085_s0 }
  0x5d   : > { %p1518_p0 = scmp.lt.u32.totalorder %s1516_s15, %s1512_s27  ;;  %p1520_p8 = scmp.lt.u32.totalorder %s1512_s27, %s1791_s26 }
  0x5e   : > { %p1514_p11 = pnand %p1513_p6, %p1117_p2 }
  0x5f   : > { %p1519_p7 = por %p1518_p0, %p1517_p13 }
  0x60   : > { %p1515_p12 = pneg %p1514_p11 }
  0x61   : > { %p1521_p9 = por %p1520_p8, %p1519_p7 }
  0x63   : > { %p1522_p10 = pnand %p1521_p9, %p1515_p12 }
  0x65   : > { %1525 = shalt.err (!%p1522_p10)
}
  0x66   : > { %s1526_s12 = scalar_lea.vmem %s1793_s9, %s1780_s10  ;;  %s1616_s11 = smov [#allocation2]  }
  0x67   : > { %p1527_p1 = scmp.ne.s32.totalorder %s1793_s9, %s1526_s12  ;;  %s1530_s28 = sshll.u32 %s1616_s11, 4  ;;  %s1531_s28 = int_to_ptr.vmem [resolvable:$false] %s1530_s28 }
  0x68   : > { %s1532_s23 = scalar_lea.vmem %s1531_s28, 16384  ;;  %p1533_p6 = scmp.lt.s32.totalorder %s1793_s9, %s1531_s28 }
  0x69   : > { %p1528_p3 = pnand %p1527_p1, %p1117_p2  ;;  %p1534_p11 = scmp.lt.s32.totalorder %s1532_s23, %s1526_s12 }
  0x6b   : > { %p1529_p5 = pneg %p1528_p3  ;;  %p1535_p13 = por %p1534_p11, %p1533_p6 }
  0x6d   : > { %p1536_p0 = pnand %p1535_p13, %p1529_p5 }
  0x6f   : > { %1539 = shalt.err (!%p1536_p0)
}
  0x70   : > { %s1617_s25 = smov 256   ;;  %s1618_s27 = smov 16  }
  0x71   : > { %233 = dma.hbm_to_vmem [thread:$0]  (%p1117_p2), %s1791_s26, %s1780_s10, %s1793_s9, %s1783_s8, %s1617_s25, %s1617_s25, %s1618_s27  }
  0x72 PF: > { %p2102_p12 = scmp.ne.s32.totalorder %s2099_s7, 0 }
  0x73   : > { %s1823_s13 = sand.u32 (!%p2102_p12), 1, %s1602_s19   ;;  %p2103_p7 = scmp.ne.s32.totalorder (!%p2102_p12), %s2096_s29, 0 }
  0x74   : > { %239 = sbr.rel (%p2102_p12) target bundleno = 733 (0x2dd), region = 40  ;;  %s1123_s14 = sshll.u32 (!%p2102_p12), %s1823_s13, 9 }
  0x75   : > { %s242_s15 = scalar_lea.sflag (!%p2102_p12), [#allocation3], %s1823_s13  ;;  %s1827_s16 = scalar_lea.vmem (!%p2102_p12), [#allocation2], %s1123_s14 }
  0x7b   : > { %1585 = dma.done.wait (%p2103_p7), %s242_s15, 8192  }
  0x7c   : > { %1587 = vsyncadd (%p2103_p7), %s242_s15, 4294959104  ;;  %p2104_p2 = scmp.eq.s32.totalorder %s1673_s22, 0 }
  0x7e   : > { %1589 = dma.done.wait (%p2104_p2), [#allocation6], 3072   ;;  %p2105_p8 = pmov %p2104_p2 }
  0x7f   : > { %v1432_v0 = vld [vmem:[#allocation5 + $0x40] sm:$0xff]   ;;  %v1434_v2 = vld [vmem:[#allocation5 + $0x48] sm:$0xff]   ;;  %v1436_v4 = vld [vmem:[#allocation5 + $0x50] sm:$0xff]   ;;  %s1126_s10 = sshll.u32 %s1823_s13, 8  ;;  %s997_s17 = scalar_lea.sflag [#allocation4], %s1823_s13 }
  0x80   : > { %1591 = vsyncadd (%p2105_p8), [#allocation6], 4294964224  ;;  %v1433_v1 = vld [vmem:[#allocation5] sm:$0xff]   ;;  %1166 = vmatprep.subr.bf16.mxu0 %v1432_v0  ;;  %1350 = vmatprep.subr.bf16.mxu1 %v1432_v0  ;;  %v1435_v3 = vld [vmem:[#allocation5 + $0x8] sm:$0xff]   ;;  %s1958_s9 = scalar_lea.vmem [#allocation8], %s1126_s10  ;;  %p2106_p9 = scmp.ne.s32.totalorder %s2097_s30, 0 }
  0x81   : > { %1167 = vmatpush3.bf16.msra.mxu0 %v1433_v1  ;;  %1358 = vmatpush3.bf16.msra.mxu1 %v1433_v1  ;;  %v1437_v5 = vld [vmem:[#allocation5 + $0x10] sm:$0xff]   ;;  %v1438_v6 = vld [vmem:[#allocation5 + $0x58] sm:$0xff]   ;;  %v1440_v8 = vld [vmem:[#allocation5 + $0x60] sm:$0xff]   ;;  %s1154_s12 = sshll.u32 (%p2106_p9), %s1673_s22, 5 }
  0x82   : > { %1168 = vmatprep.subr.bf16.mxu0 %v1434_v2  ;;  %1351 = vmatprep.subr.bf16.mxu1 %v1434_v2  ;;  %v1439_v7 = vld [vmem:[#allocation5 + $0x18] sm:$0xff]   ;;  %v1441_v9 = vld [vmem:[#allocation5 + $0x20] sm:$0xff]   ;;  %v1442_v10 = vld [vmem:[#allocation5 + $0x68] sm:$0xff]   ;;  %s1005_s11 = ssub.s32 (%p2106_p9), 50, %s1154_s12 }
  0x83   : > { %v293_v11 = vld [vmem:[%s1827_s16 + $0x8] sm:$0xff]  ;;  %v295_v12 = vld [vmem:[%s1827_s16 + $0x18] sm:$0xff]  ;;  %v1444_v15 = vld [vmem:[#allocation5 + $0x70] sm:$0xff]   ;;  %p1006_p10 = scmp.lt.s32.totalorder (%p2106_p9), %s1005_s11, 32 }
  0x84   : > { %v357_v13 = vpack.c.bf16 %v295_v12, %v293_v11  ;;  %v1443_v14 = vld [vmem:[#allocation5 + $0x28] sm:$0xff]   ;;  %v1445_v16 = vld [vmem:[#allocation5 + $0x30] sm:$0xff]   ;;  %v1446_v17 = vld [vmem:[#allocation5 + $0x78] sm:$0xff]  }
  0x85   : > { %1169 = vmatpush3.bf16.msra.mxu0 %v1435_v3  ;;  %1359 = vmatpush3.bf16.msra.mxu1 %v1435_v3  ;;  %v1447_v18 = vld [vmem:[#allocation5 + $0x38] sm:$0xff]   ;;  %v292_v19 = vld [vmem:[%s1827_s16] sm:$0xff]  ;;  %v294_v20 = vld [vmem:[%s1827_s16 + $0x10] sm:$0xff] }
  0x86   : > { %1170 = vmatprep.subr.bf16.mxu0 %v1436_v4  ;;  %1352 = vmatprep.subr.bf16.mxu1 %v1436_v4  ;;  %v297_v21 = vld [vmem:[%s1827_s16 + $0x28] sm:$0xff]  ;;  %v299_v22 = vld [vmem:[%s1827_s16 + $0x38] sm:$0xff]  ;;  %v356_v25 = vpack.c.bf16 %v294_v20, %v292_v19  ;;  %v340_v27 = vld [vmem:[%s1827_s16 + $0x180] sm:$0xff] }
  0x87   : > { %555 = vmatprep.mubr.bf16.mxu0 %v357_v13  ;;  %v341_v23 = vld [vmem:[%s1827_s16 + $0x188] sm:$0xff]  ;;  %v343_v24 = vld [vmem:[%s1827_s16 + $0x198] sm:$0xff]  ;;  %v342_v28 = vld [vmem:[%s1827_s16 + $0x190] sm:$0xff]  ;;  %v359_v29 = vpack.c.bf16 %v299_v22, %v297_v21 }
  0x88   : > { %v381_v26 = vpack.c.bf16 %v343_v24, %v341_v23  ;;  %v380_v30 = vpack.c.bf16 %v342_v28, %v340_v27  ;;  %v345_v31 = vld [vmem:[%s1827_s16 + $0x1a8] sm:$0xff]  ;;  %v347_v32 = vld [vmem:[%s1827_s16 + $0x1b8] sm:$0xff]  ;;  %v296_v34 = vld [vmem:[%s1827_s16 + $0x20] sm:$0xff] }
  0x89   : > { %1171 = vmatpush3.bf16.msra.mxu0 %v1437_v5  ;;  %1360 = vmatpush3.bf16.msra.mxu1 %v1437_v5  ;;  %v383_v33 = vpack.c.bf16 %v347_v32, %v345_v31  ;;  %v298_v35 = vld [vmem:[%s1827_s16 + $0x30] sm:$0xff]  ;;  %v301_v36 = vld [vmem:[%s1827_s16 + $0x48] sm:$0xff]  ;;  %v303_v37 = vld [vmem:[%s1827_s16 + $0x58] sm:$0xff] }
  0x8a   : > { %1172 = vmatprep.subr.bf16.mxu0 %v1438_v6  ;;  %1353 = vmatprep.subr.bf16.mxu1 %v1438_v6  ;;  %v344_v38 = vld [vmem:[%s1827_s16 + $0x1a0] sm:$0xff]  ;;  %v346_v39 = vld [vmem:[%s1827_s16 + $0x1b0] sm:$0xff]  ;;  %v349_v40 = vld [vmem:[%s1827_s16 + $0x1c8] sm:$0xff]  ;;  %v358_v42 = vpack.c.bf16 %v298_v35, %v296_v34  ;;  %v361_v44 = vpack.c.bf16 %v303_v37, %v301_v36 }
  0x8b   : > { %651 = vmatprep.mubr.bf16.mxu1 %v381_v26  ;;  %v351_v41 = vld [vmem:[%s1827_s16 + $0x1d8] sm:$0xff]  ;;  %v1448_v43 = vld [vmem:[#allocation7] sm:$0xff]   ;;  %v382_v45 = vpack.c.bf16 %v346_v39, %v344_v38  ;;  %v1449_v46 = vld [vmem:[#allocation7 + $0x8] sm:$0xff]  }
  0x8c   : > { %v385_v47 = vpack.c.bf16 %v351_v41, %v349_v40  ;;  %v1450_v48 = vld [vmem:[#allocation7 + $0x10] sm:$0xff]   ;;  %v300_v49 = vld [vmem:[%s1827_s16 + $0x40] sm:$0xff]  ;;  %v305_v51 = vld [vmem:[%s1827_s16 + $0x68] sm:$0xff] }
  0x8d   : > { %1173 = vmatpush3.bf16.msra.mxu0 %v1439_v7  ;;  %1361 = vmatpush3.bf16.msra.mxu1 %v1439_v7  ;;  %v302_v50 = vld [vmem:[%s1827_s16 + $0x50] sm:$0xff]  ;;  %v307_v52 = vld [vmem:[%s1827_s16 + $0x78] sm:$0xff]  ;;  %v348_v53 = vld [vmem:[%s1827_s16 + $0x1c0] sm:$0xff] }
  0x8e   : > { %1174 = vmatprep.subr.bf16.mxu0 %v1440_v8  ;;  %1354 = vmatprep.subr.bf16.mxu1 %v1440_v8  ;;  %v350_v54 = vld [vmem:[%s1827_s16 + $0x1d0] sm:$0xff]  ;;  %v353_v55 = vld [vmem:[%s1827_s16 + $0x1e8] sm:$0xff]  ;;  %v355_v56 = vld [vmem:[%s1827_s16 + $0x1f8] sm:$0xff]  ;;  %v360_v57 = vpack.c.bf16 %v302_v50, %v300_v49  ;;  %v363_v58 = vpack.c.bf16 %v307_v52, %v305_v51 }
  0x8f   : > { %v384_v59 = vpack.c.bf16 %v350_v54, %v348_v53  ;;  %v387_v60 = vpack.c.bf16 %v355_v56, %v353_v55  ;;  %v304_v61 = vld [vmem:[%s1827_s16 + $0x60] sm:$0xff]  ;;  %v306_v62 = vld [vmem:[%s1827_s16 + $0x70] sm:$0xff]  ;;  %v309_v63 = vld [vmem:[%s1827_s16 + $0x88] sm:$0xff] }
  0x90   : > { %v311_v0 = vld [vmem:[%s1827_s16 + $0x98] sm:$0xff]  ;;  %v352_v1 = vld [vmem:[%s1827_s16 + $0x1e0] sm:$0xff]  ;;  %v354_v2 = vld [vmem:[%s1827_s16 + $0x1f0] sm:$0xff]  ;;  %v362_v3 = vpack.c.bf16 %v306_v62, %v304_v61 }
  0x91   : > { %1175 = vmatpush3.bf16.msra.mxu0 %v1441_v9  ;;  %1362 = vmatpush3.bf16.msra.mxu1 %v1441_v9  ;;  %v365_v4 = vpack.c.bf16 %v311_v0, %v309_v63  ;;  %v386_v5 = vpack.c.bf16 %v354_v2, %v352_v1  ;;  %v308_v6 = vld [vmem:[%s1827_s16 + $0x80] sm:$0xff]  ;;  %v310_v7 = vld [vmem:[%s1827_s16 + $0x90] sm:$0xff]  ;;  %v313_v8 = vld [vmem:[%s1827_s16 + $0xa8] sm:$0xff] }
  0x92   : > { %1176 = vmatprep.subr.bf16.mxu0 %v1442_v10  ;;  %1355 = vmatprep.subr.bf16.mxu1 %v1442_v10  ;;  %v315_v9 = vld [vmem:[%s1827_s16 + $0xb8] sm:$0xff]  ;;  %v364_v10 = vpack.c.bf16 %v310_v7, %v308_v6  ;;  %v312_v12 = vld [vmem:[%s1827_s16 + $0xa0] sm:$0xff]  ;;  %v314_v13 = vld [vmem:[%s1827_s16 + $0xb0] sm:$0xff] }
  0x93   : > { %v367_v11 = vpack.c.bf16 %v315_v9, %v313_v8  ;;  %v318_v19 = vld [vmem:[%s1827_s16 + $0xd0] sm:$0xff]  ;;  %v321_v20 = vld [vmem:[%s1827_s16 + $0xe8] sm:$0xff]  ;;  %v323_v21 = vld [vmem:[%s1827_s16 + $0xf8] sm:$0xff] }
  0x94   : > { %v371_v23 = vpack.c.bf16 %v323_v21, %v321_v20  ;;  %v320_v24 = vld [vmem:[%s1827_s16 + $0xe0] sm:$0xff]  ;;  %v325_v26 = vld [vmem:[%s1827_s16 + $0x108] sm:$0xff]  ;;  %v327_v27 = vld [vmem:[%s1827_s16 + $0x118] sm:$0xff] }
  0x95   : > { %1177 = vmatpush3.bf16.msra.mxu0 %v1443_v14  ;;  %1363 = vmatpush3.bf16.msra.mxu1 %v1443_v14  ;;  %v317_v14 = vld [vmem:[%s1827_s16 + $0xc8] sm:$0xff]  ;;  %v326_v31 = vld [vmem:[%s1827_s16 + $0x110] sm:$0xff]  ;;  %v328_v36 = vld [vmem:[%s1827_s16 + $0x120] sm:$0xff] }
  0x96   : > { %1178 = vmatprep.subr.bf16.mxu0 %v1444_v15  ;;  %1356 = vmatprep.subr.bf16.mxu1 %v1444_v15  ;;  %v319_v15 = vld [vmem:[%s1827_s16 + $0xd8] sm:$0xff]  ;;  %v329_v32 = vld [vmem:[%s1827_s16 + $0x128] sm:$0xff]  ;;  %v330_v37 = vld [vmem:[%s1827_s16 + $0x130] sm:$0xff] }
  0x97   : > { %v333_v38 = vld [vmem:[%s1827_s16 + $0x148] sm:$0xff]  ;;  %v335_v39 = vld [vmem:[%s1827_s16 + $0x158] sm:$0xff]  ;;  %v374_v40 = vpack.c.bf16 %v330_v37, %v328_v36  ;;  %v338_v49 = vld [vmem:[%s1827_s16 + $0x170] sm:$0xff] }
  0x98   : > { %v377_v41 = vpack.c.bf16 %v335_v39, %v333_v38  ;;  %v1451_v50 = vld [vmem:[#allocation7 + $0x18] sm:$0xff]   ;;  %v1452_v52 = vld [vmem:[#allocation7 + $0x20] sm:$0xff]   ;;  %v1453_v53 = vld [vmem:[#allocation7 + $0x28] sm:$0xff]  }
  0x99   : > { %1179 = vmatpush3.bf16.msra.mxu0 %v1445_v16  ;;  %1364 = vmatpush3.bf16.msra.mxu1 %v1445_v16  ;;  %v366_v16 = vpack.c.bf16 %v314_v13, %v312_v12  ;;  %v1454_v54 = vld [vmem:[#allocation7 + $0x30] sm:$0xff]   ;;  %v1455_v55 = vld [vmem:[#allocation7 + $0x38] sm:$0xff]  }
  0x9a   : > { %1180 = vmatprep.subr.bf16.mxu0 %v1446_v17  ;;  %1357 = vmatprep.subr.bf16.mxu1 %v1446_v17  ;;  %v369_v17 = vpack.c.bf16 %v319_v15, %v317_v14 }
  0x9d   : > { %1181 = vmatpush3.bf16.msra.mxu0 %v1447_v18  ;;  %1365 = vmatpush3.bf16.msra.mxu1 %v1447_v18  ;;  %v316_v18 = vld [vmem:[%s1827_s16 + $0xc0] sm:$0xff] }
  0x9e   : > { %1302 = vmatprep.subr.bf16.mxu1 %v1448_v43  ;;  %v368_v22 = vpack.c.bf16 %v318_v19, %v316_v18 }
  0xa0   : > { %556 = vmatmul.mubr.bf16.vlgmr.msra.gmra.mrb[0].mxu0 %v356_v25  ;;  %652 = vmatmul.mubr.bf16.vlgmr.msra.gmra.mrb[0].mxu1 %v380_v30  ;;  %v322_v25 = vld [vmem:[%s1827_s16 + $0xf0] sm:$0xff]  ;;  %v324_v30 = vld [vmem:[%s1827_s16 + $0x100] sm:$0xff] }
  0xa1   : > { %563 = vmatprep.mubr.bf16.mxu0 %v359_v29  ;;  %659 = vmatprep.mubr.bf16.mxu1 %v383_v33  ;;  %v370_v28 = vpack.c.bf16 %v322_v25, %v320_v24  ;;  %v373_v29 = vpack.c.bf16 %v327_v27, %v325_v26  ;;  %v331_v33 = vld [vmem:[%s1827_s16 + $0x138] sm:$0xff]  ;;  %v372_v34 = vpack.c.bf16 %v326_v31, %v324_v30 }
  0xa2   : > { %1303 = vmatpush3.bf16.msra.mxu1 %v1448_v43  ;;  %v375_v35 = vpack.c.bf16 %v331_v33, %v329_v32  ;;  %v334_v43 = vld [vmem:[%s1827_s16 + $0x150] sm:$0xff] }
  0xa3   : > { %1304 = vmatprep.subr.bf16.mxu1 %v1449_v46 }
  0xa6   : > { %1305 = vmatpush3.bf16.msra.mxu1 %v1449_v46 }
  0xa7   : > { %1306 = vmatprep.subr.bf16.mxu1 %v1450_v48 }
  0xa8   : > { %564 = vmatmul.mubr.bf16.gmra.mrb[4].mxu0 %v358_v42  ;;  %660 = vmatmul.mubr.bf16.gmra.mrb[4].mxu1 %v382_v45  ;;  %v332_v42 = vld [vmem:[%s1827_s16 + $0x140] sm:$0xff]  ;;  %v339_v45 = vld [vmem:[%s1827_s16 + $0x178] sm:$0xff] }
  0xa9   : > { %571 = vmatprep.mubr.bf16.mxu0 %v361_v44  ;;  %667 = vmatprep.mubr.bf16.mxu1 %v385_v47  ;;  %v337_v44 = vld [vmem:[%s1827_s16 + $0x168] sm:$0xff]  ;;  %v376_v46 = vpack.c.bf16 %v334_v43, %v332_v42 }
  0xaa   : > { %1307 = vmatpush3.bf16.msra.mxu1 %v1450_v48  ;;  %v379_v47 = vpack.c.bf16 %v339_v45, %v337_v44  ;;  %v336_v48 = vld [vmem:[%s1827_s16 + $0x160] sm:$0xff] }
  0xab   : > { %1308 = vmatprep.subr.bf16.mxu1 %v1451_v50  ;;  %v378_v51 = vpack.c.bf16 %v338_v49, %v336_v48 }
  0xae   : > { %1309 = vmatpush3.bf16.msra.mxu1 %v1451_v50 }
  0xaf   : > { %1310 = vmatprep.subr.bf16.mxu1 %v1452_v52 }
  0xb0   : > { %572 = vmatmul.mubr.bf16.gmra.mrb[8].mxu0 %v360_v57  ;;  %668 = vmatmul.mubr.bf16.gmra.mrb[8].mxu1 %v384_v59  ;;  %v1904_v57 = vld [vmem:[%s2087_s2] ss:$0 sm:$0xff] }
  0xb1   : > { %579 = vmatprep.mubr.bf16.mxu0 %v363_v58  ;;  %675 = vmatprep.mubr.bf16.mxu1 %v387_v60 }
  0xb2   : > { %1311 = vmatpush3.bf16.msra.mxu1 %v1452_v52 }
  0xb3   : > { %1312 = vmatprep.subr.bf16.mxu1 %v1453_v53 }
  0xb6   : > { %1313 = vmatpush3.bf16.msra.mxu1 %v1453_v53 }
  0xb7   : > { %1314 = vmatprep.subr.bf16.mxu1 %v1454_v54 }
  0xb8   : > { %580 = vmatmul.mubr.bf16.gmra.mrb[12].mxu0 %v362_v3  ;;  %676 = vmatmul.mubr.bf16.gmra.mrb[12].mxu1 %v386_v5 }
  0xb9   : > { %587 = vmatprep.mubr.bf16.mxu0 %v365_v4 }
  0xba   : > { %1315 = vmatpush3.bf16.msra.mxu1 %v1454_v54 }
  0xbb   : > { %1316 = vmatprep.subr.bf16.mxu1 %v1455_v55 }
  0xbe   : > { %1317 = vmatpush3.bf16.msra.mxu1 %v1455_v55 }
  0xc0   : > { %588 = vmatmul.mubr.bf16.gmra.mrb[16].mxu0 %v364_v10 }
  0xc1   : > { %595 = vmatprep.mubr.bf16.mxu0 %v367_v11 }
  0xc8   : > { %596 = vmatmul.mubr.bf16.gmra.mrb[20].mxu0 %v366_v16 }
  0xc9   : > { %603 = vmatprep.mubr.bf16.mxu0 %v369_v17 }
  0xd0   : > { %604 = vmatmul.mubr.bf16.gmra.mrb[24].mxu0 %v368_v22 }
  0xd1   : > { %611 = vmatprep.mubr.bf16.mxu0 %v371_v23 }
  0xd8   : > { %612 = vmatmul.mubr.bf16.gmra.mrb[28].mxu0 %v370_v28 }
  0xd9   : > { %619 = vmatprep.mubr.bf16.mxu0 %v373_v29 }
  0xe0   : > { %620 = vmatmul.mubr.bf16.gmra.mrb[32].mxu0 %v372_v34 }
  0xe1   : > { %627 = vmatprep.mubr.bf16.mxu0 %v375_v35 }
  0xe8   : > { %628 = vmatmul.mubr.bf16.gmra.mrb[36].mxu0 %v374_v40 }
  0xe9   : > { %635 = vmatprep.mubr.bf16.mxu0 %v377_v41 }
  0xf0   : > { %636 = vmatmul.mubr.bf16.gmra.mrb[40].mxu0 %v376_v46 }
  0xf1   : > { %643 = vmatprep.mubr.bf16.mxu0 %v379_v47 }
  0xf8   : > { %644 = vmatmul.mubr.bf16.gmra.mrb[44].mxu0 %v378_v51 }
 0x173   : > { %v1182_v56 = vpop.f32.mrb[0].mxu0  ;;  %v1254_v59 = vpop.f32.mrb[0].mxu1 }
 0x174   : > { %v1183_v58 = vpop.f32.mrb[1].mxu0  ;;  %v1255_v62 = vpop.f32.mrb[1].mxu1 }
 0x175   : > { %v1184_v60 = vadd.f32 %v1183_v58, %v1182_v56  ;;  %v1185_v61 = vpop.f32.mrb[2].mxu0  ;;  %v1256_v0 = vadd.f32 %v1255_v62, %v1254_v59  ;;  %v1257_v1 = vpop.f32.mrb[2].mxu1 }
 0x176   : > { %v1186_v63 = vpop.f32.mrb[3].mxu0  ;;  %v1258_v4 = vpop.f32.mrb[3].mxu1 }
 0x177   : > { %v558_v2 = vadd.f32 %v1184_v60, %v1904_v57  ;;  %v1187_v3 = vadd.f32 %v1186_v63, %v1185_v61  ;;  %v654_v5 = vadd.f32 %v1256_v0, %v1904_v57  ;;  %v1259_v6 = vadd.f32 %v1258_v4, %v1257_v1 }
 0x179   : > { %v561_v7 = vadd.f32 %v1187_v3, %v1904_v57  ;;  %v708_v8 = vmax.f32 %v654_v5, 0.0  ;;  %v657_v9 = vadd.f32 %v1259_v6, %v1904_v57  ;;  %v684_v10 = vmax.f32 %v558_v2, 0.0 }
 0x17b   : > { %v685_v11 = vmax.f32 %v561_v7, 0.0  ;;  %v1188_v12 = vpop.f32.mrb[4].mxu0  ;;  %v709_v14 = vmax.f32 %v657_v9, 0.0  ;;  %v1260_v15 = vpop.f32.mrb[4].mxu1 }
 0x17c   : > { %v1189_v13 = vpop.f32.mrb[5].mxu0  ;;  %v1261_v19 = vpop.f32.mrb[5].mxu1 }
 0x17d   : > { %v1190_v16 = vadd.f32 %v1189_v13, %v1188_v12  ;;  %v1191_v17 = vpop.f32.mrb[6].mxu0  ;;  %v716_v18 = vpack.c.bf16 %v685_v11, %v684_v10  ;;  %v1262_v21 = vadd.f32 %v1261_v19, %v1260_v15  ;;  %v1263_v22 = vpop.f32.mrb[6].mxu1  ;;  %v1910_v23 = vpack.c.bf16 %v709_v14, %v708_v8 }
 0x17e   : > { %v1192_v20 = vpop.f32.mrb[7].mxu0  ;;  %v1264_v26 = vpop.f32.mrb[7].mxu1 }
 0x17f   : > { %v566_v24 = vadd.f32 %v1190_v16, %v1904_v57  ;;  %v1193_v25 = vadd.f32 %v1192_v20, %v1191_v17  ;;  %1318 = vmatprep.mubr.bf16.mxu1 %v716_v18  ;;  %v662_v27 = vadd.f32 %v1262_v21, %v1904_v57  ;;  %v1265_v28 = vadd.f32 %v1264_v26, %v1263_v22 }
 0x181   : > { %v569_v29 = vadd.f32 %v1193_v25, %v1904_v57  ;;  %v710_v30 = vmax.f32 %v662_v27, 0.0  ;;  %v665_v31 = vadd.f32 %v1265_v28, %v1904_v57  ;;  %v686_v32 = vmax.f32 %v566_v24, 0.0 }
 0x183   : > { %v687_v33 = vmax.f32 %v569_v29, 0.0  ;;  %v1194_v34 = vpop.f32.mrb[8].mxu0  ;;  %v711_v36 = vmax.f32 %v665_v31, 0.0  ;;  %v1266_v37 = vpop.f32.mrb[8].mxu1 }
 0x184   : > { %v1195_v35 = vpop.f32.mrb[9].mxu0  ;;  %v1267_v41 = vpop.f32.mrb[9].mxu1 }
 0x185   : > { %v717_v38 = vpack.c.bf16 %v687_v33, %v686_v32  ;;  %v1196_v39 = vadd.f32 %v1195_v35, %v1194_v34  ;;  %v1197_v40 = vpop.f32.mrb[10].mxu0  ;;  %v1268_v43 = vadd.f32 %v1267_v41, %v1266_v37  ;;  %v1269_v44 = vpop.f32.mrb[10].mxu1  ;;  %v1916_v45 = vpack.c.bf16 %v711_v36, %v710_v30 }
 0x186   : > { %v1198_v42 = vpop.f32.mrb[11].mxu0  ;;  %v1270_v48 = vpop.f32.mrb[11].mxu1 }
 0x187   : > { %v574_v46 = vadd.f32 %v1196_v39, %v1904_v57  ;;  %v1199_v47 = vadd.f32 %v1198_v42, %v1197_v40  ;;  %1319 = vmatmul.mubr.bf16.vlgmr.msra.gmra.mrb[16].mxu1 %v717_v38  ;;  %v670_v49 = vadd.f32 %v1268_v43, %v1904_v57  ;;  %v1271_v50 = vadd.f32 %v1270_v48, %v1269_v44 }
 0x189   : > { %v577_v51 = vadd.f32 %v1199_v47, %v1904_v57  ;;  %v712_v52 = vmax.f32 %v670_v49, 0.0  ;;  %v673_v53 = vadd.f32 %v1271_v50, %v1904_v57  ;;  %v688_v54 = vmax.f32 %v574_v46, 0.0 }
 0x18b   : > { %v689_v55 = vmax.f32 %v577_v51, 0.0  ;;  %v1200_v56 = vpop.f32.mrb[12].mxu0  ;;  %v713_v59 = vmax.f32 %v673_v53, 0.0  ;;  %v1272_v60 = vpop.f32.mrb[12].mxu1 }
 0x18c   : > { %v1201_v58 = vpop.f32.mrb[13].mxu0  ;;  %v1273_v0 = vpop.f32.mrb[13].mxu1 }
 0x18d   : > { %v1202_v61 = vadd.f32 %v1201_v58, %v1200_v56  ;;  %v1203_v62 = vpop.f32.mrb[14].mxu0  ;;  %v718_v63 = vpack.c.bf16 %v689_v55, %v688_v54  ;;  %v1274_v2 = vadd.f32 %v1273_v0, %v1272_v60  ;;  %v1275_v3 = vpop.f32.mrb[14].mxu1  ;;  %v1922_v4 = vpack.c.bf16 %v713_v59, %v712_v52 }
 0x18e   : > { %v1204_v1 = vpop.f32.mrb[15].mxu0  ;;  %v1276_v7 = vpop.f32.mrb[15].mxu1 }
 0x18f   : > { %v582_v5 = vadd.f32 %v1202_v61, %v1904_v57  ;;  %v1205_v6 = vadd.f32 %v1204_v1, %v1203_v62  ;;  %1322 = vmatprep.mubr.bf16.mxu1 %v718_v63  ;;  %v678_v8 = vadd.f32 %v1274_v2, %v1904_v57  ;;  %v1277_v9 = vadd.f32 %v1276_v7, %v1275_v3 }
 0x191   : > { %v585_v10 = vadd.f32 %v1205_v6, %v1904_v57  ;;  %v714_v11 = vmax.f32 %v678_v8, 0.0  ;;  %v681_v12 = vadd.f32 %v1277_v9, %v1904_v57  ;;  %v690_v13 = vmax.f32 %v582_v5, 0.0 }
 0x193   : > { %v691_v14 = vmax.f32 %v585_v10, 0.0  ;;  %v1206_v15 = vpop.f32.mrb[16].mxu0  ;;  %v715_v17 = vmax.f32 %v681_v12, 0.0 }
 0x194   : > { %v1207_v16 = vpop.f32.mrb[17].mxu0 }
 0x195   : > { %v1208_v18 = vadd.f32 %v1207_v16, %v1206_v15  ;;  %v1209_v19 = vpop.f32.mrb[18].mxu0  ;;  %v719_v20 = vpack.c.bf16 %v691_v14, %v690_v13  ;;  %v1928_v22 = vpack.c.bf16 %v715_v17, %v714_v11 }
 0x196   : > { %v1210_v21 = vpop.f32.mrb[19].mxu0 }
 0x197   : > { %v590_v24 = vadd.f32 %v1208_v18, %v1904_v57  ;;  %v1211_v25 = vadd.f32 %v1210_v21, %v1209_v19  ;;  %1323 = vmatmul.mubr.bf16.gmra.mrb[20].mxu1 %v719_v20 }
 0x199   : > { %v593_v26 = vadd.f32 %v1211_v25, %v1904_v57  ;;  %v692_v27 = vmax.f32 %v590_v24, 0.0 }
 0x19b   : > { %v693_v28 = vmax.f32 %v593_v26, 0.0  ;;  %v1212_v29 = vpop.f32.mrb[20].mxu0 }
 0x19c   : > { %v1213_v30 = vpop.f32.mrb[21].mxu0 }
 0x19d   : > { %v1214_v31 = vadd.f32 %v1213_v30, %v1212_v29  ;;  %v1215_v32 = vpop.f32.mrb[22].mxu0  ;;  %v720_v33 = vpack.c.bf16 %v693_v28, %v692_v27 }
 0x19e   : > { %v1216_v34 = vpop.f32.mrb[23].mxu0 }
 0x19f   : > { %v598_v35 = vadd.f32 %v1214_v31, %v1904_v57  ;;  %v1217_v36 = vadd.f32 %v1216_v34, %v1215_v32  ;;  %1326 = vmatprep.mubr.bf16.mxu1 %v720_v33 }
 0x1a1   : > { %v601_v37 = vadd.f32 %v1217_v36, %v1904_v57  ;;  %v694_v38 = vmax.f32 %v598_v35, 0.0 }
 0x1a3   : > { %v695_v39 = vmax.f32 %v601_v37, 0.0  ;;  %v1218_v40 = vpop.f32.mrb[24].mxu0 }
 0x1a4   : > { %v1219_v41 = vpop.f32.mrb[25].mxu0 }
 0x1a5   : > { %v1220_v42 = vadd.f32 %v1219_v41, %v1218_v40  ;;  %v1221_v43 = vpop.f32.mrb[26].mxu0  ;;  %v721_v44 = vpack.c.bf16 %v695_v39, %v694_v38 }
 0x1a6   : > { %v1222_v46 = vpop.f32.mrb[27].mxu0 }
 0x1a7   : > { %v606_v47 = vadd.f32 %v1220_v42, %v1904_v57  ;;  %v1223_v48 = vadd.f32 %v1222_v46, %v1221_v43  ;;  %1327 = vmatmul.mubr.bf16.gmra.mrb[24].mxu1 %v721_v44 }
 0x1a9   : > { %v609_v49 = vadd.f32 %v1223_v48, %v1904_v57  ;;  %v696_v50 = vmax.f32 %v606_v47, 0.0 }
 0x1ab   : > { %v697_v51 = vmax.f32 %v609_v49, 0.0  ;;  %v1224_v52 = vpop.f32.mrb[28].mxu0  ;;  %v1954_v49 = vld [vmem:[%s2089_s4] ss:$0 sm:$0xff] }
 0x1ac   : > { %v1225_v53 = vpop.f32.mrb[29].mxu0 }
 0x1ad   : > { %v1226_v54 = vadd.f32 %v1225_v53, %v1224_v52  ;;  %v1227_v55 = vpop.f32.mrb[30].mxu0  ;;  %v722_v56 = vpack.c.bf16 %v697_v51, %v696_v50 }
 0x1ae   : > { %v1228_v58 = vpop.f32.mrb[31].mxu0 }
 0x1af   : > { %v614_v59 = vadd.f32 %v1226_v54, %v1904_v57  ;;  %v1229_v60 = vadd.f32 %v1228_v58, %v1227_v55  ;;  %1330 = vmatprep.mubr.bf16.mxu1 %v722_v56 }
 0x1b1   : > { %v617_v61 = vadd.f32 %v1229_v60, %v1904_v57  ;;  %v698_v62 = vmax.f32 %v614_v59, 0.0 }
 0x1b3   : > { %v699_v63 = vmax.f32 %v617_v61, 0.0  ;;  %v1230_v0 = vpop.f32.mrb[32].mxu0 }
 0x1b4   : > { %v1231_v1 = vpop.f32.mrb[33].mxu0 }
 0x1b5   : > { %v1232_v2 = vadd.f32 %v1231_v1, %v1230_v0  ;;  %v1233_v3 = vpop.f32.mrb[34].mxu0  ;;  %v723_v5 = vpack.c.bf16 %v699_v63, %v698_v62 }
 0x1b6   : > { %v1234_v6 = vpop.f32.mrb[35].mxu0 }
 0x1b7   : > { %v622_v7 = vadd.f32 %v1232_v2, %v1904_v57  ;;  %v1235_v8 = vadd.f32 %v1234_v6, %v1233_v3  ;;  %1331 = vmatmul.mubr.bf16.gmra.mrb[28].mxu1 %v723_v5 }
 0x1b9   : > { %v625_v9 = vadd.f32 %v1235_v8, %v1904_v57  ;;  %v700_v10 = vmax.f32 %v622_v7, 0.0 }
 0x1bb   : > { %v701_v11 = vmax.f32 %v625_v9, 0.0  ;;  %v1236_v12 = vpop.f32.mrb[36].mxu0 }
 0x1bc   : > { %v1237_v13 = vpop.f32.mrb[37].mxu0 }
 0x1bd   : > { %v1238_v14 = vadd.f32 %v1237_v13, %v1236_v12  ;;  %v1239_v15 = vpop.f32.mrb[38].mxu0  ;;  %v724_v16 = vpack.c.bf16 %v701_v11, %v700_v10 }
 0x1be   : > { %v1240_v17 = vpop.f32.mrb[39].mxu0 }
 0x1bf   : > { %v630_v18 = vadd.f32 %v1238_v14, %v1904_v57  ;;  %v1241_v19 = vadd.f32 %v1240_v17, %v1239_v15  ;;  %1334 = vmatprep.mubr.bf16.mxu1 %v724_v16 }
 0x1c1   : > { %v633_v20 = vadd.f32 %v1241_v19, %v1904_v57  ;;  %v702_v21 = vmax.f32 %v630_v18, 0.0 }
 0x1c3   : > { %v703_v24 = vmax.f32 %v633_v20, 0.0  ;;  %v1242_v25 = vpop.f32.mrb[40].mxu0 }
 0x1c4   : > { %v1243_v26 = vpop.f32.mrb[41].mxu0 }
 0x1c5   : > { %v1244_v27 = vadd.f32 %v1243_v26, %v1242_v25  ;;  %v1245_v28 = vpop.f32.mrb[42].mxu0  ;;  %v725_v29 = vpack.c.bf16 %v703_v24, %v702_v21 }
 0x1c6   : > { %v1246_v30 = vpop.f32.mrb[43].mxu0 }
 0x1c7   : > { %v638_v31 = vadd.f32 %v1244_v27, %v1904_v57  ;;  %v1247_v32 = vadd.f32 %v1246_v30, %v1245_v28  ;;  %1335 = vmatmul.mubr.bf16.gmra.mrb[32].mxu1 %v725_v29 }
 0x1c9   : > { %v641_v33 = vadd.f32 %v1247_v32, %v1904_v57  ;;  %v704_v34 = vmax.f32 %v638_v31, 0.0 }
 0x1cb   : > { %v705_v35 = vmax.f32 %v641_v33, 0.0  ;;  %v1248_v36 = vpop.f32.mrb[44].mxu0 }
 0x1cc   : > { %v1249_v37 = vpop.f32.mrb[45].mxu0 }
 0x1cd   : > { %v1250_v38 = vadd.f32 %v1249_v37, %v1248_v36  ;;  %v1251_v39 = vpop.f32.mrb[46].mxu0  ;;  %v726_v40 = vpack.c.bf16 %v705_v35, %v704_v34 }
 0x1ce   : > { %v1252_v41 = vpop.f32.mrb[47].mxu0 }
 0x1cf   : > { %v646_v42 = vadd.f32 %v1250_v38, %v1904_v57  ;;  %v1253_v43 = vadd.f32 %v1252_v41, %v1251_v39  ;;  %1338 = vmatprep.mubr.bf16.mxu1 %v726_v40 }
 0x1d1   : > { %v649_v44 = vadd.f32 %v1253_v43, %v1904_v57  ;;  %v706_v46 = vmax.f32 %v646_v42, 0.0 }
 0x1d3   : > { %v707_v47 = vmax.f32 %v649_v44, 0.0 }
 0x1d5   : > { %v727_v48 = vpack.c.bf16 %v707_v47, %v706_v46 }
 0x1d7   : > { %1339 = vmatmul.mubr.bf16.gmra.mrb[36].mxu1 %v727_v48 }
 0x1d8   : > { %1342 = vmatprep.mubr.bf16.mxu1 %v1910_v23 }
 0x1df   : > { %1343 = vmatmul.mubr.bf16.gmra.mrb[40].mxu1 %v1916_v45 }
 0x1e0   : > { %1346 = vmatprep.mubr.bf16.mxu1 %v1922_v4 }
 0x1e7   : > { %1347 = vmatmul.mubr.bf16.gmra.mrb[44].mxu1 %v1928_v22 }
 0x25a   : > { %v1320_v50 = vpop.f32.mrb[16].mxu1 }
 0x25b   : > { %v846_v57 = vadd.f32 %v1320_v50, %v1954_v49  ;;  %v837_v51 = vpop.f32.mrb[17].mxu1 }
 0x25c   : > { %v838_v52 = vadd.f32 %v1954_v49, %v837_v51  ;;  %v1321_v53 = vpop.f32.mrb[18].mxu1 }
 0x25d   : > { %966 = vst [vmem:[%s1958_s9 + $0x10] sm:$0xff] %v846_v57  ;;  %v849_v23 = vadd.f32 %v1321_v53, %v1954_v49  ;;  %v840_v45 = vpop.f32.mrb[19].mxu1 }
 0x25e   : > { %964 = vst [vmem:[%s1958_s9] sm:$0xff] %v838_v52  ;;  %v841_v4 = vadd.f32 %v1954_v49, %v840_v45 }
 0x25f   : > { %967 = vst [vmem:[%s1958_s9 + $0x18] sm:$0xff] %v849_v23 }
 0x260   : > { %965 = vst [vmem:[%s1958_s9 + $0x8] sm:$0xff] %v841_v4 }
 0x26a   : > { %v1324_v22 = vpop.f32.mrb[20].mxu1 }
 0x26b   : > { %v862_v54 = vadd.f32 %v1324_v22, %v1954_v49  ;;  %v853_v55 = vpop.f32.mrb[21].mxu1 }
 0x26c   : > { %v854_v56 = vadd.f32 %v1954_v49, %v853_v55  ;;  %v1325_v58 = vpop.f32.mrb[22].mxu1 }
 0x26d   : > { %970 = vst [vmem:[%s1958_s9 + $0x30] sm:$0xff] %v862_v54  ;;  %v865_v59 = vadd.f32 %v1325_v58, %v1954_v49  ;;  %v856_v60 = vpop.f32.mrb[23].mxu1 }
 0x26e   : > { %968 = vst [vmem:[%s1958_s9 + $0x20] sm:$0xff] %v854_v56  ;;  %v857_v61 = vadd.f32 %v1954_v49, %v856_v60 }
 0x26f   : > { %971 = vst [vmem:[%s1958_s9 + $0x38] sm:$0xff] %v865_v59 }
 0x270   : > { %969 = vst [vmem:[%s1958_s9 + $0x28] sm:$0xff] %v857_v61 }
 0x27a   : > { %v1328_v62 = vpop.f32.mrb[24].mxu1 }
 0x27b   : > { %v878_v63 = vadd.f32 %v1328_v62, %v1954_v49  ;;  %v869_v0 = vpop.f32.mrb[25].mxu1 }
 0x27c   : > { %v870_v1 = vadd.f32 %v1954_v49, %v869_v0  ;;  %v1329_v2 = vpop.f32.mrb[26].mxu1 }
 0x27d   : > { %974 = vst [vmem:[%s1958_s9 + $0x50] sm:$0xff] %v878_v63  ;;  %v881_v3 = vadd.f32 %v1329_v2, %v1954_v49  ;;  %v872_v5 = vpop.f32.mrb[27].mxu1 }
 0x27e   : > { %972 = vst [vmem:[%s1958_s9 + $0x40] sm:$0xff] %v870_v1  ;;  %v873_v6 = vadd.f32 %v1954_v49, %v872_v5 }
 0x27f   : > { %975 = vst [vmem:[%s1958_s9 + $0x58] sm:$0xff] %v881_v3 }
 0x280   : > { %973 = vst [vmem:[%s1958_s9 + $0x48] sm:$0xff] %v873_v6 }
 0x28a   : > { %v1332_v7 = vpop.f32.mrb[28].mxu1 }
 0x28b   : > { %v894_v8 = vadd.f32 %v1332_v7, %v1954_v49  ;;  %v885_v9 = vpop.f32.mrb[29].mxu1 }
 0x28c   : > { %v886_v10 = vadd.f32 %v1954_v49, %v885_v9  ;;  %v1333_v11 = vpop.f32.mrb[30].mxu1 }
 0x28d   : > { %978 = vst [vmem:[%s1958_s9 + $0x70] sm:$0xff] %v894_v8  ;;  %v897_v12 = vadd.f32 %v1333_v11, %v1954_v49  ;;  %v888_v13 = vpop.f32.mrb[31].mxu1 }
 0x28e   : > { %976 = vst [vmem:[%s1958_s9 + $0x60] sm:$0xff] %v886_v10  ;;  %v889_v14 = vadd.f32 %v1954_v49, %v888_v13 }
 0x28f   : > { %979 = vst [vmem:[%s1958_s9 + $0x78] sm:$0xff] %v897_v12 }
 0x290   : > { %977 = vst [vmem:[%s1958_s9 + $0x68] sm:$0xff] %v889_v14 }
 0x29a   : > { %v1336_v15 = vpop.f32.mrb[32].mxu1 }
 0x29b   : > { %v910_v16 = vadd.f32 %v1336_v15, %v1954_v49  ;;  %v901_v17 = vpop.f32.mrb[33].mxu1 }
 0x29c   : > { %v902_v18 = vadd.f32 %v1954_v49, %v901_v17  ;;  %v1337_v19 = vpop.f32.mrb[34].mxu1 }
 0x29d   : > { %982 = vst [vmem:[%s1958_s9 + $0x90] sm:$0xff] %v910_v16  ;;  %v913_v20 = vadd.f32 %v1337_v19, %v1954_v49  ;;  %v904_v21 = vpop.f32.mrb[35].mxu1 }
 0x29e   : > { %980 = vst [vmem:[%s1958_s9 + $0x80] sm:$0xff] %v902_v18  ;;  %v905_v24 = vadd.f32 %v1954_v49, %v904_v21 }
 0x29f   : > { %983 = vst [vmem:[%s1958_s9 + $0x98] sm:$0xff] %v913_v20 }
 0x2a0   : > { %981 = vst [vmem:[%s1958_s9 + $0x88] sm:$0xff] %v905_v24 }
 0x2aa   : > { %v1340_v25 = vpop.f32.mrb[36].mxu1 }
 0x2ab   : > { %v926_v26 = vadd.f32 %v1340_v25, %v1954_v49  ;;  %v917_v27 = vpop.f32.mrb[37].mxu1 }
 0x2ac   : > { %v918_v28 = vadd.f32 %v1954_v49, %v917_v27  ;;  %v1341_v29 = vpop.f32.mrb[38].mxu1 }
 0x2ad   : > { %986 = vst [vmem:[%s1958_s9 + $0xb0] sm:$0xff] %v926_v26  ;;  %v929_v30 = vadd.f32 %v1341_v29, %v1954_v49  ;;  %v920_v31 = vpop.f32.mrb[39].mxu1 }
 0x2ae   : > { %984 = vst [vmem:[%s1958_s9 + $0xa0] sm:$0xff] %v918_v28  ;;  %v921_v32 = vadd.f32 %v1954_v49, %v920_v31 }
 0x2af   : > { %987 = vst [vmem:[%s1958_s9 + $0xb8] sm:$0xff] %v929_v30 }
 0x2b0   : > { %985 = vst [vmem:[%s1958_s9 + $0xa8] sm:$0xff] %v921_v32 }
 0x2b2   : > { %v1344_v33 = vpop.f32.mrb[40].mxu1 }
 0x2b3   : > { %v942_v34 = vadd.f32 %v1344_v33, %v1954_v49  ;;  %v933_v35 = vpop.f32.mrb[41].mxu1 }
 0x2b4   : > { %v934_v36 = vadd.f32 %v1954_v49, %v933_v35  ;;  %v1345_v37 = vpop.f32.mrb[42].mxu1 }
 0x2b5   : > { %990 = vst [vmem:[%s1958_s9 + $0xd0] sm:$0xff] %v942_v34  ;;  %v945_v38 = vadd.f32 %v1345_v37, %v1954_v49  ;;  %v936_v39 = vpop.f32.mrb[43].mxu1 }
 0x2b6   : > { %988 = vst [vmem:[%s1958_s9 + $0xc0] sm:$0xff] %v934_v36  ;;  %v937_v40 = vadd.f32 %v1954_v49, %v936_v39 }
 0x2b7   : > { %991 = vst [vmem:[%s1958_s9 + $0xd8] sm:$0xff] %v945_v38 }
 0x2b8   : > { %989 = vst [vmem:[%s1958_s9 + $0xc8] sm:$0xff] %v937_v40 }
 0x2ba   : > { %v1348_v41 = vpop.f32.mrb[44].mxu1  ;;  %1003 = sbr.rel (!%p2106_p9) target bundleno = 733 (0x2dd), region = 56 }
 0x2bb   : > { %v958_v42 = vadd.f32 %v1348_v41, %v1954_v49  ;;  %v949_v43 = vpop.f32.mrb[45].mxu1 }
 0x2bc   : > { %v950_v44 = vadd.f32 %v1954_v49, %v949_v43  ;;  %v1349_v46 = vpop.f32.mrb[46].mxu1 }
 0x2bd   : > { %994 = vst [vmem:[%s1958_s9 + $0xf0] sm:$0xff] %v958_v42  ;;  %v961_v47 = vadd.f32 %v1349_v46, %v1954_v49  ;;  %v952_v48 = vpop.f32.mrb[47].mxu1 }
 0x2be   : > { %992 = vst [vmem:[%s1958_s9 + $0xe0] sm:$0xff] %v950_v44  ;;  %v953_v50 = vadd.f32 %v1954_v49, %v952_v48 }
 0x2bf   : > { %995 = vst [vmem:[%s1958_s9 + $0xf8] sm:$0xff] %v961_v47 }
 0x2c0   : > { %993 = vst [vmem:[%s1958_s9 + $0xe8] sm:$0xff] %v953_v50 }
 0x2c1   : > { %s2116_s11 = smov (!%p1006_p10, %s1005_s11), 32 }
 0x2c2   : > { %s2026_s28 = sshll.u32 %s2116_s11, 7 }
 0x2c3   : > { %s1010_s23 = ssub.s32 4096, %s2026_s28 }
 0x2c4   : > { %1011 = vsyncadd %s997_s17, %s1010_s23  ;;  %p1156_p1 = scmp.ne.s32.totalorder %s2026_s28, 0  ;;  %s1165_s30 = sshll.u32 %s1673_s22, 12 }
 0x2c5   : > { %s2036_s14 = scalar_lea.hbm %s2090_s5, %s1165_s30  ;;  %s1016_s15 = sshll.u32 %s1958_s9, 4  ;;  %s2039_s15 = int_to_ptr.vmem [resolvable:$true] %s1016_s15 }
 0x2c6   : > { %s1540_s16 = scalar_lea.vmem %s2039_s15, %s2026_s28  ;;  %s1619_s29 = smov [#allocation8]  }
 0x2c7   : > { %p1541_p3 = scmp.ne.s32.totalorder %s2039_s15, %s1540_s16  ;;  %s1544_s7 = sshll.u32 %s1619_s29, 4  ;;  %s1545_s7 = int_to_ptr.vmem [resolvable:$false] %s1544_s7 }
 0x2c8   : > { %s1546_s22 = scalar_lea.vmem %s1545_s7, 8192  ;;  %p1547_p11 = scmp.lt.s32.totalorder %s2039_s15, %s1545_s7 }
 0x2c9   : > { %p1542_p5 = pnand %p1541_p3, %p1156_p1  ;;  %p1548_p13 = scmp.lt.s32.totalorder %s1546_s22, %s1540_s16 }
 0x2cb   : > { %p1543_p6 = pneg %p1542_p5  ;;  %p1549_p0 = por %p1548_p13, %p1547_p11 }
 0x2cd   : > { %p1550_p12 = pnand %p1549_p0, %p1543_p6 }
 0x2cf   : > { %1553 = shalt.err (!%p1550_p12)
}
 0x2d0   : > { %s1554_s10 = scalar_lea.hbm %s2036_s14, %s2026_s28  ;;  %s1558_s9 = scalar_lea.hbm %s2090_s5, 6400 }
 0x2d1   : > { %p1555_p7 = scmp.ne.s32.totalorder %s2036_s14, %s1554_s10  ;;  %p1559_p9 = scmp.lt.u32.totalorder %s2036_s14, %s2090_s5 }
 0x2d2   : > { %p1560_p10 = scmp.lt.u32.totalorder %s1558_s9, %s1554_s10  ;;  %p1562_p5 = scmp.lt.u32.totalorder %s1554_s10, %s2036_s14 }
 0x2d3   : > { %p1556_p2 = pnand %p1555_p7, %p1156_p1 }
 0x2d4   : > { %p1561_p3 = por %p1560_p10, %p1559_p9 }
 0x2d5   : > { %p1557_p8 = pneg %p1556_p2 }
 0x2d6   : > { %p1563_p6 = por %p1562_p5, %p1561_p3 }
 0x2d8   : > { %p1564_p11 = pnand %p1563_p6, %p1557_p8 }
 0x2da   : > { %1567 = shalt.err (!%p1564_p11)
}
 0x2db   : > { %s1620_s23 = smov 128   ;;  %s1621_s30 = smov 8  }
 0x2dc   : > { %1022 = dma.vmem_to_hbm [thread:$0]  (%p1156_p1), %s2039_s15, %s2026_s28, %s2036_s14, %s997_s17, %s1620_s23, %s1620_s23, %s1621_s30  }
 0x2dd PF: > { %s1031_s25 = sand.u32 1, %s1598_s18   ;;  %p2107_p13 = scmp.ne.s32.totalorder %s2098_s6, 0 }
 0x2de   : > { %s1032_s27 = scalar_lea.sflag [#allocation4], %s1031_s25 }
 0x2df   : > { %p1384_p0 = pnand %p1112_p4, %p2107_p13 }
 0x2e1   : > { %1593 = dma.done.wait (!%p1384_p0), %s1032_s27, 4096  }
 0x2e2   : > { %1595 = vsyncadd (!%p1384_p0), %s1032_s27, 4294963200  ;;  %s2108_s16 = sld [smem:[#allocation12_spill]]  ;;  %p19_p12 = scmp.ge.s32.totalorder %s1677_s24, 4  }
 0x2e3   : > { %s2109_s18 = smov %s1602_s19  ;;  %s2110_s19 = smov %s1606_s20 }
 0x2e4   : > { %s2112_s21 = smov %s1677_s24  ;;  %21 = sbr.rel (!%p19_p12) target bundleno = 6 (0x6), region = 93 }
 0x2e8   : > { %s2111_s20 = smov %s2108_s16 }
 0x2eb   :  { %1037 = vsyncpa [#allocation3], 1 }
 0x2ec   :  { %1039 = vsyncpa [#allocation3 + $0x1], 1 }
 0x2ed   :  { %1040 = vsyncpa [#allocation6], 1 }
 0x2ee   :  { %1041 = vsyncpa [#allocation4], 1 }
 0x2ef   :  { %1043 = vsyncpa [#allocation4 + $0x1], 1 }

</bundles_post_ra>
